<compile_context>
chip_gen: v6e
topology: v6e:2x2x1
jax: 0.10.0
libtpu: 0.0.40
codegen_flags: <defaults>
</compile_context>

<pallas_src>
import functools

import jax
import jax.numpy as jnp
from jax import lax
from jax.experimental import pallas as pl
from jax.experimental.pallas import tpu as pltpu


def _ftb_block_kernel(x_ref, w1_ref, w2_ref, s2_ref, t2_ref, w3_ref,
                      out_ref, pbuf_ref, *, H, W, cin, cout, d):
    HW = H * W
    P = d * (W + 1)            # flat halo length on each side of padded buffer

    x = x_ref[0]                                                   # (cin, HW)

    # ---- conv1: 1x1, no bias (spatial folded into matmul N) -----------------
    h1 = jnp.dot(w1_ref[...], x, preferred_element_type=jnp.float32)  # (cout, HW)

    # Column-validity masks for the horizontal taps (pure in-register iota).
    col = lax.broadcasted_iota(jnp.int32, (1, HW), 1) % W
    mask_l = (col >= d).astype(jnp.float32)        # taps with kx == 0
    mask_r = (col < W - d).astype(jnp.float32)     # taps with kx == 2

    # Zero only the two halo strips; the interior is fully overwritten below.
    pbuf_ref[:, :P] = jnp.zeros((cout, P), jnp.float32)
    pbuf_ref[:, P + HW:P + HW + P] = jnp.zeros((cout, P), jnp.float32)

    def dilated_conv3x3(h, w_ref):
        """3x3 conv, dilation=d, padding=d, on (cout, HW) activations."""
        pbuf_ref[:, P:P + HW] = h                  # stage interior (halo stays 0)
        acc = jnp.zeros((cout, HW), jnp.float32)
        for ky in range(3):
            for kx in range(3):
                s = d * (ky * W + kx)              # flat shift of this tap
                sl = pbuf_ref[:, s:s + HW]         # (cout, HW) shifted window
                if kx == 0:
                    sl = sl * mask_l
                elif kx == 2:
                    sl = sl * mask_r
                acc = acc + jnp.dot(w_ref[ky * 3 + kx], sl,
                                    preferred_element_type=jnp.float32)
        return acc

    # ---- conv2 (bias) -> BN -> ReLU; bias + BN folded to scale/shift --------
    h2 = dilated_conv3x3(h1, w2_ref)
    h2 = jnp.maximum(h2 * s2_ref[...] + t2_ref[...], 0.0)

    # ---- conv3 (no bias) + residual -> ReLU ----------------------------------
    h3 = dilated_conv3x3(h2, w3_ref)
    out_ref[0] = jnp.maximum(h3 + h1, 0.0).astype(out_ref.dtype)


def ftb_block_pallas(x_nchw, params, *, dim_in, dim_out, dilation=2):
    N, cin, H, W = x_nchw.shape
    assert cin == dim_in
    HW = H * W
    P = dilation * (W + 1)

    # NCHW -> (N, C, H*W): the lane axis becomes the (large) spatial extent.
    x = x_nchw.reshape(N, cin, HW).astype(jnp.float32)

    kernel = functools.partial(_ftb_block_kernel, H=H, W=W, cin=cin,
                               cout=dim_out, d=dilation)

    full = lambda shape: pl.BlockSpec(shape, lambda b: (0,) * len(shape))

    out = pl.pallas_call(
        kernel,
        out_shape=jax.ShapeDtypeStruct((N, dim_out, HW), jnp.float32),
        grid_spec=pltpu.PrefetchScalarGridSpec(
            num_scalar_prefetch=0,
            grid=(N,),
            in_specs=[
                pl.BlockSpec((1, cin, HW), lambda b: (b, 0, 0)),   # x
                full((dim_out, cin)),                              # w1 (1x1)
                full((9, dim_out, dim_out)),                       # w2 taps
                full((dim_out, 1)),                                # BN scale
                full((dim_out, 1)),                                # bias+BN shift
                full((9, dim_out, dim_out)),                       # w3 taps
            ],
            out_specs=pl.BlockSpec((1, dim_out, HW), lambda b: (b, 0, 0)),
            scratch_shapes=[pltpu.VMEM((dim_out, HW + 2 * P), jnp.float32)],
        ),
        compiler_params=pltpu.CompilerParams(
            dimension_semantics=("parallel",)),
    )(x, params["w1"], params["w2"], params["s2"], params["t2"], params["w3"])

    return out.reshape(N, dim_out, H, W)


# ----------------------------- parameter setup ------------------------------
def make_params(key, dim_in, dim_out, *, dilation=2, eps=1e-5):
    ks = jax.random.split(key, 8)
    w1 = 0.2 * jax.random.normal(ks[0], (dim_out, dim_in), jnp.float32)
    w2 = 0.2 * jax.random.normal(ks[1], (dim_out, dim_out, 3, 3), jnp.float32)
    b2 = 0.1 * jax.random.normal(ks[2], (dim_out,), jnp.float32)
    w3 = 0.2 * jax.random.normal(ks[3], (dim_out, dim_out, 3, 3), jnp.float32)
    gamma = jax.random.uniform(ks[4], (dim_out,), jnp.float32, 0.5, 1.5)
    beta = 0.1 * jax.random.normal(ks[5], (dim_out,), jnp.float32)
    mean = 0.1 * jax.random.normal(ks[6], (dim_out,), jnp.float32)
    var = jax.random.uniform(ks[7], (dim_out,), jnp.float32, 0.5, 1.5)

    s = gamma / jnp.sqrt(var + eps)          # eval-mode BN -> affine
    t = beta - mean * s

    def pack_taps(w):                         # (co, ci, 3, 3) -> (9, co, ci)
        co, ci = w.shape[0], w.shape[1]
        return jnp.transpose(w, (2, 3, 0, 1)).reshape(9, co, ci)

    params = dict(
        w1=w1,
        w2=pack_taps(w2),
        s2=s.reshape(dim_out, 1),                        # BN scale
        t2=(b2 * s + t).reshape(dim_out, 1),             # conv2 bias folded thru BN
        w3=pack_taps(w3),
    )
    raw = dict(w1=w1, w2=w2, b2=b2, w3=w3, gamma=gamma, beta=beta,
               mean=mean, var=var, eps=eps, dilation=dilation)
    return params, raw


# ------------------------- pure-JAX reference (NCHW) ------------------------
def ref_forward(x_nchw, raw):
    x = x_nchw.astype(jnp.float32)
    dn = ("NCHW", "OIHW", "NCHW")
    hp = lax.Precision.HIGHEST
    dil = raw["dilation"]

    h = lax.conv_general_dilated(x, raw["w1"][:, :, None, None], (1, 1), "VALID",
                                 dimension_numbers=dn, precision=hp)
    residual = h
    out = lax.conv_general_dilated(h, raw["w2"], (1, 1),
                                   [(dil, dil), (dil, dil)],
                                   rhs_dilation=(dil, dil),
                                   dimension_numbers=dn, precision=hp)
    out = out + raw["b2"][None, :, None, None]
    s = raw["gamma"] / jnp.sqrt(raw["var"] + raw["eps"])
    t = raw["beta"] - raw["mean"] * s
    out = out * s[None, :, None, None] + t[None, :, None, None]
    out = jnp.maximum(out, 0.0)
    out = lax.conv_general_dilated(out, raw["w3"], (1, 1),
                                   [(dil, dil), (dil, dil)],
                                   rhs_dilation=(dil, dil),
                                   dimension_numbers=dn, precision=hp)
    out = jnp.maximum(out + residual, 0.0)
    return out


if __name__ == "__main__":
    # FTB_block(dim_in=4, dim_out=8) on a (2, 4, 16, 16) input.
    dim_in, dim_out, H, W, N = 4, 8, 16, 16, 2
    key = jax.random.PRNGKey(0)
    kx, kp = jax.random.split(key)
    x = jax.random.normal(kx, (N, dim_in, H, W), jnp.float32)       # NCHW
    params, raw = make_params(kp, dim_in, dim_out)

    out = ftb_block_pallas(x, params, dim_in=dim_in, dim_out=dim_out)
    out = jax.block_until_ready(out)

    ref = ref_forward(x, raw)
    assert out.shape == (N, dim_out, H, W)
    err = float(jnp.max(jnp.abs(out - ref)))
    assert err < 2e-3, err
    print("KERNEL_OK")
</pallas_src>

<mosaic_0001>
module attributes {stable_mosaic.version = 11 : i64} {
  func.func @_ftb_block_kernel(%arg0: i32, %arg1: memref<1x4x256xf32, #tpu.memory_space<vmem>>, %arg2: memref<8x4xf32, #tpu.memory_space<vmem>>, %arg3: memref<9x8x8xf32, #tpu.memory_space<vmem>>, %arg4: memref<8x1xf32, #tpu.memory_space<vmem>>, %arg5: memref<8x1xf32, #tpu.memory_space<vmem>>, %arg6: memref<9x8x8xf32, #tpu.memory_space<vmem>>, %arg7: memref<1x8x256xf32, #tpu.memory_space<vmem>>, %arg8: memref<8x324xf32, #tpu.memory_space<vmem>>) attributes {dimension_semantics = [#tpu.dimension_semantics<parallel>], iteration_bounds = array<i64: 2>, scalar_prefetch = 0 : i64, scratch_operands = 1 : i64, tpu.core_type = #tpu.core_type<tc>, window_params = [{transform_indices = @transform_0, window_bounds = array<i64: 1, 4, 256>}, {pipeline_mode = #tpu.pipeline_mode<synchronous>, transform_indices = @transform_1, window_bounds = array<i64: 8, 4>}, {pipeline_mode = #tpu.pipeline_mode<synchronous>, transform_indices = @transform_2, window_bounds = array<i64: 9, 8, 8>}, {pipeline_mode = #tpu.pipeline_mode<synchronous>, transform_indices = @transform_3, window_bounds = array<i64: 8, 1>}, {pipeline_mode = #tpu.pipeline_mode<synchronous>, transform_indices = @transform_4, window_bounds = array<i64: 8, 1>}, {pipeline_mode = #tpu.pipeline_mode<synchronous>, transform_indices = @transform_5, window_bounds = array<i64: 9, 8, 8>}, {transform_indices = @transform_6, window_bounds = array<i64: 1, 8, 256>}]} {
    %c0 = arith.constant 0 : index
    %c0_0 = arith.constant 0 : index
    %c0_1 = arith.constant 0 : index
    %0 = vector.load %arg1[%c0, %c0_0, %c0_1] : memref<1x4x256xf32, #tpu.memory_space<vmem>>, vector<1x4x256xf32>
    %1 = vector.shape_cast %0 : vector<1x4x256xf32> to vector<4x256xf32>
    %c0_2 = arith.constant 0 : index
    %c0_3 = arith.constant 0 : index
    %2 = vector.load %arg2[%c0_2, %c0_3] : memref<8x4xf32, #tpu.memory_space<vmem>>, vector<8x4xf32>
    %cst = arith.constant dense<0.000000e+00> : vector<8x256xf32>
    %3 = tpu.matmul %2, %1, %cst {dimension_numbers = #tpu.dot_dimension_numbers<[1], [0], [0], [1], [0, 0, 1, 1], [], []>} : vector<8x4xf32>, vector<4x256xf32>, vector<8x256xf32> -> vector<8x256xf32>
    %4 = tpu.iota {dimensions = array<i32: 1>} : vector<1x256xi32>
    %c16_i32 = arith.constant 16 : i32
    %c0_i32 = arith.constant 0 : i32
    %5 = arith.cmpi eq, %c16_i32, %c0_i32 : i32
    %c1_i32 = arith.constant 1 : i32
    %6 = arith.select %5, %c1_i32, %c16_i32 : i32
    %7 = vector.broadcast %6 : i32 to vector<1x256xi32>
    %8 = arith.remsi %4, %7 : vector<1x256xi32>
    %c0_i32_4 = arith.constant 0 : i32
    %9 = vector.broadcast %c0_i32_4 : i32 to vector<1x256xi32>
    %10 = arith.cmpi ne, %8, %9 : vector<1x256xi32>
    %c0_i32_5 = arith.constant 0 : i32
    %11 = vector.broadcast %c0_i32_5 : i32 to vector<1x256xi32>
    %12 = arith.cmpi slt, %8, %11 : vector<1x256xi32>
    %c0_i32_6 = arith.constant 0 : i32
    %13 = arith.cmpi slt, %6, %c0_i32_6 : i32
    %14 = vector.broadcast %13 : i1 to vector<1x256xi1>
    %15 = vector.broadcast %14 : vector<1x256xi1> to vector<1x256xi1>
    %16 = arith.xori %12, %15 : vector<1x256xi1>
    %17 = arith.andi %16, %10 : vector<1x256xi1>
    %18 = vector.broadcast %6 : i32 to vector<1x256xi32>
    %19 = arith.addi %8, %18 : vector<1x256xi32>
    %20 = arith.select %17, %19, %8 : vector<1x256xi1>, vector<1x256xi32>
    %c2_i32 = arith.constant 2 : i32
    %21 = vector.broadcast %c2_i32 : i32 to vector<1x256xi32>
    %22 = arith.cmpi sge, %20, %21 : vector<1x256xi32>
    %23 = arith.extui %22 : vector<1x256xi1> to vector<1x256xi32>
    %24 = arith.sitofp %23 : vector<1x256xi32> to vector<1x256xf32>
    %c14_i32 = arith.constant 14 : i32
    %25 = vector.broadcast %c14_i32 : i32 to vector<1x256xi32>
    %26 = arith.cmpi slt, %20, %25 : vector<1x256xi32>
    %27 = arith.extui %26 : vector<1x256xi1> to vector<1x256xi32>
    %28 = arith.sitofp %27 : vector<1x256xi32> to vector<1x256xf32>
    %cst_7 = arith.constant 0.000000e+00 : f32
    %29 = vector.broadcast %cst_7 : f32 to vector<8x34xf32>
    %c0_8 = arith.constant 0 : index
    %c0_9 = arith.constant 0 : index
    %30 = vector.load %arg8[%c0_8, %c0_9] : memref<8x324xf32, #tpu.memory_space<vmem>>, vector<8x34xf32>
    tpu.vector_store %arg8[%c0_8, %c0_9], %29 {strides = array<i32>} : memref<8x324xf32, #tpu.memory_space<vmem>>, vector<8x34xf32>,
    %cst_10 = arith.constant 0.000000e+00 : f32
    %31 = vector.broadcast %cst_10 : f32 to vector<8x34xf32>
    %c0_11 = arith.constant 0 : index
    %c290 = arith.constant 290 : index
    %32 = vector.load %arg8[%c0_11, %c290] : memref<8x324xf32, #tpu.memory_space<vmem>>, vector<8x34xf32>
    tpu.vector_store %arg8[%c0_11, %c290], %31 {strides = array<i32>} : memref<8x324xf32, #tpu.memory_space<vmem>>, vector<8x34xf32>,
    %c0_12 = arith.constant 0 : index
    %c34 = arith.constant 34 : index
    %33 = vector.load %arg8[%c0_12, %c34] : memref<8x324xf32, #tpu.memory_space<vmem>>, vector<8x256xf32>
    tpu.vector_store %arg8[%c0_12, %c34], %3 {strides = array<i32>} : memref<8x324xf32, #tpu.memory_space<vmem>>, vector<8x256xf32>,
    %cst_13 = arith.constant 0.000000e+00 : f32
    %34 = vector.broadcast %cst_13 : f32 to vector<8x256xf32>
    %c0_14 = arith.constant 0 : index
    %c0_15 = arith.constant 0 : index
    %35 = vector.load %arg8[%c0_14, %c0_15] : memref<8x324xf32, #tpu.memory_space<vmem>>, vector<8x256xf32>
    %36 = vector.broadcast %24 : vector<1x256xf32> to vector<8x256xf32>
    %37 = arith.mulf %35, %36 : vector<8x256xf32>
    %c0_16 = arith.constant 0 : index
    %c0_17 = arith.constant 0 : index
    %c0_18 = arith.constant 0 : index
    %38 = vector.load %arg3[%c0_16, %c0_17, %c0_18] : memref<9x8x8xf32, #tpu.memory_space<vmem>>, vector<1x8x8xf32>
    %39 = vector.shape_cast %38 : vector<1x8x8xf32> to vector<8x8xf32>
    %cst_19 = arith.constant dense<0.000000e+00> : vector<8x256xf32>
    %40 = tpu.matmul %39, %37, %cst_19 {dimension_numbers = #tpu.dot_dimension_numbers<[1], [0], [0], [1], [0, 0, 1, 1], [], []>} : vector<8x8xf32>, vector<8x256xf32>, vector<8x256xf32> -> vector<8x256xf32>
    %41 = arith.addf %34, %40 : vector<8x256xf32>
    %c0_20 = arith.constant 0 : index
    %c2 = arith.constant 2 : index
    %42 = vector.load %arg8[%c0_20, %c2] : memref<8x324xf32, #tpu.memory_space<vmem>>, vector<8x256xf32>
    %c1 = arith.constant 1 : index
    %c0_21 = arith.constant 0 : index
    %c0_22 = arith.constant 0 : index
    %43 = vector.load %arg3[%c1, %c0_21, %c0_22] : memref<9x8x8xf32, #tpu.memory_space<vmem>>, vector<1x8x8xf32>
    %44 = vector.shape_cast %43 : vector<1x8x8xf32> to vector<8x8xf32>
    %cst_23 = arith.constant dense<0.000000e+00> : vector<8x256xf32>
    %45 = tpu.matmul %44, %42, %cst_23 {dimension_numbers = #tpu.dot_dimension_numbers<[1], [0], [0], [1], [0, 0, 1, 1], [], []>} : vector<8x8xf32>, vector<8x256xf32>, vector<8x256xf32> -> vector<8x256xf32>
    %46 = arith.addf %41, %45 : vector<8x256xf32>
    %c0_24 = arith.constant 0 : index
    %c4 = arith.constant 4 : index
    %47 = vector.load %arg8[%c0_24, %c4] : memref<8x324xf32, #tpu.memory_space<vmem>>, vector<8x256xf32>
    %48 = vector.broadcast %28 : vector<1x256xf32> to vector<8x256xf32>
    %49 = arith.mulf %47, %48 : vector<8x256xf32>
    %c2_25 = arith.constant 2 : index
    %c0_26 = arith.constant 0 : index
    %c0_27 = arith.constant 0 : index
    %50 = vector.load %arg3[%c2_25, %c0_26, %c0_27] : memref<9x8x8xf32, #tpu.memory_space<vmem>>, vector<1x8x8xf32>
    %51 = vector.shape_cast %50 : vector<1x8x8xf32> to vector<8x8xf32>
    %cst_28 = arith.constant dense<0.000000e+00> : vector<8x256xf32>
    %52 = tpu.matmul %51, %49, %cst_28 {dimension_numbers = #tpu.dot_dimension_numbers<[1], [0], [0], [1], [0, 0, 1, 1], [], []>} : vector<8x8xf32>, vector<8x256xf32>, vector<8x256xf32> -> vector<8x256xf32>
    %53 = arith.addf %46, %52 : vector<8x256xf32>
    %c0_29 = arith.constant 0 : index
    %c32 = arith.constant 32 : index
    %54 = vector.load %arg8[%c0_29, %c32] : memref<8x324xf32, #tpu.memory_space<vmem>>, vector<8x256xf32>
    %55 = vector.broadcast %24 : vector<1x256xf32> to vector<8x256xf32>
    %56 = arith.mulf %54, %55 : vector<8x256xf32>
    %c3 = arith.constant 3 : index
    %c0_30 = arith.constant 0 : index
    %c0_31 = arith.constant 0 : index
    %57 = vector.load %arg3[%c3, %c0_30, %c0_31] : memref<9x8x8xf32, #tpu.memory_space<vmem>>, vector<1x8x8xf32>
    %58 = vector.shape_cast %57 : vector<1x8x8xf32> to vector<8x8xf32>
    %cst_32 = arith.constant dense<0.000000e+00> : vector<8x256xf32>
    %59 = tpu.matmul %58, %56, %cst_32 {dimension_numbers = #tpu.dot_dimension_numbers<[1], [0], [0], [1], [0, 0, 1, 1], [], []>} : vector<8x8xf32>, vector<8x256xf32>, vector<8x256xf32> -> vector<8x256xf32>
    %60 = arith.addf %53, %59 : vector<8x256xf32>
    %c0_33 = arith.constant 0 : index
    %c34_34 = arith.constant 34 : index
    %61 = vector.load %arg8[%c0_33, %c34_34] : memref<8x324xf32, #tpu.memory_space<vmem>>, vector<8x256xf32>
    %c4_35 = arith.constant 4 : index
    %c0_36 = arith.constant 0 : index
    %c0_37 = arith.constant 0 : index
    %62 = vector.load %arg3[%c4_35, %c0_36, %c0_37] : memref<9x8x8xf32, #tpu.memory_space<vmem>>, vector<1x8x8xf32>
    %63 = vector.shape_cast %62 : vector<1x8x8xf32> to vector<8x8xf32>
    %cst_38 = arith.constant dense<0.000000e+00> : vector<8x256xf32>
    %64 = tpu.matmul %63, %61, %cst_38 {dimension_numbers = #tpu.dot_dimension_numbers<[1], [0], [0], [1], [0, 0, 1, 1], [], []>} : vector<8x8xf32>, vector<8x256xf32>, vector<8x256xf32> -> vector<8x256xf32>
    %65 = arith.addf %60, %64 : vector<8x256xf32>
    %c0_39 = arith.constant 0 : index
    %c36 = arith.constant 36 : index
    %66 = vector.load %arg8[%c0_39, %c36] : memref<8x324xf32, #tpu.memory_space<vmem>>, vector<8x256xf32>
    %67 = vector.broadcast %28 : vector<1x256xf32> to vector<8x256xf32>
    %68 = arith.mulf %66, %67 : vector<8x256xf32>
    %c5 = arith.constant 5 : index
    %c0_40 = arith.constant 0 : index
    %c0_41 = arith.constant 0 : index
    %69 = vector.load %arg3[%c5, %c0_40, %c0_41] : memref<9x8x8xf32, #tpu.memory_space<vmem>>, vector<1x8x8xf32>
    %70 = vector.shape_cast %69 : vector<1x8x8xf32> to vector<8x8xf32>
    %cst_42 = arith.constant dense<0.000000e+00> : vector<8x256xf32>
    %71 = tpu.matmul %70, %68, %cst_42 {dimension_numbers = #tpu.dot_dimension_numbers<[1], [0], [0], [1], [0, 0, 1, 1], [], []>} : vector<8x8xf32>, vector<8x256xf32>, vector<8x256xf32> -> vector<8x256xf32>
    %72 = arith.addf %65, %71 : vector<8x256xf32>
    %c0_43 = arith.constant 0 : index
    %c64 = arith.constant 64 : index
    %73 = vector.load %arg8[%c0_43, %c64] : memref<8x324xf32, #tpu.memory_space<vmem>>, vector<8x256xf32>
    %74 = vector.broadcast %24 : vector<1x256xf32> to vector<8x256xf32>
    %75 = arith.mulf %73, %74 : vector<8x256xf32>
    %c6 = arith.constant 6 : index
    %c0_44 = arith.constant 0 : index
    %c0_45 = arith.constant 0 : index
    %76 = vector.load %arg3[%c6, %c0_44, %c0_45] : memref<9x8x8xf32, #tpu.memory_space<vmem>>, vector<1x8x8xf32>
    %77 = vector.shape_cast %76 : vector<1x8x8xf32> to vector<8x8xf32>
    %cst_46 = arith.constant dense<0.000000e+00> : vector<8x256xf32>
    %78 = tpu.matmul %77, %75, %cst_46 {dimension_numbers = #tpu.dot_dimension_numbers<[1], [0], [0], [1], [0, 0, 1, 1], [], []>} : vector<8x8xf32>, vector<8x256xf32>, vector<8x256xf32> -> vector<8x256xf32>
    %79 = arith.addf %72, %78 : vector<8x256xf32>
    %c0_47 = arith.constant 0 : index
    %c66 = arith.constant 66 : index
    %80 = vector.load %arg8[%c0_47, %c66] : memref<8x324xf32, #tpu.memory_space<vmem>>, vector<8x256xf32>
    %c7 = arith.constant 7 : index
    %c0_48 = arith.constant 0 : index
    %c0_49 = arith.constant 0 : index
    %81 = vector.load %arg3[%c7, %c0_48, %c0_49] : memref<9x8x8xf32, #tpu.memory_space<vmem>>, vector<1x8x8xf32>
    %82 = vector.shape_cast %81 : vector<1x8x8xf32> to vector<8x8xf32>
    %cst_50 = arith.constant dense<0.000000e+00> : vector<8x256xf32>
    %83 = tpu.matmul %82, %80, %cst_50 {dimension_numbers = #tpu.dot_dimension_numbers<[1], [0], [0], [1], [0, 0, 1, 1], [], []>} : vector<8x8xf32>, vector<8x256xf32>, vector<8x256xf32> -> vector<8x256xf32>
    %84 = arith.addf %79, %83 : vector<8x256xf32>
    %c0_51 = arith.constant 0 : index
    %c68 = arith.constant 68 : index
    %85 = vector.load %arg8[%c0_51, %c68] : memref<8x324xf32, #tpu.memory_space<vmem>>, vector<8x256xf32>
    %86 = vector.broadcast %28 : vector<1x256xf32> to vector<8x256xf32>
    %87 = arith.mulf %85, %86 : vector<8x256xf32>
    %c8 = arith.constant 8 : index
    %c0_52 = arith.constant 0 : index
    %c0_53 = arith.constant 0 : index
    %88 = vector.load %arg3[%c8, %c0_52, %c0_53] : memref<9x8x8xf32, #tpu.memory_space<vmem>>, vector<1x8x8xf32>
    %89 = vector.shape_cast %88 : vector<1x8x8xf32> to vector<8x8xf32>
    %cst_54 = arith.constant dense<0.000000e+00> : vector<8x256xf32>
    %90 = tpu.matmul %89, %87, %cst_54 {dimension_numbers = #tpu.dot_dimension_numbers<[1], [0], [0], [1], [0, 0, 1, 1], [], []>} : vector<8x8xf32>, vector<8x256xf32>, vector<8x256xf32> -> vector<8x256xf32>
    %91 = arith.addf %84, %90 : vector<8x256xf32>
    %c0_55 = arith.constant 0 : index
    %c0_56 = arith.constant 0 : index
    %92 = vector.load %arg4[%c0_55, %c0_56] : memref<8x1xf32, #tpu.memory_space<vmem>>, vector<8x1xf32>
    %93 = vector.broadcast %92 : vector<8x1xf32> to vector<8x256xf32>
    %94 = arith.mulf %91, %93 : vector<8x256xf32>
    %c0_57 = arith.constant 0 : index
    %c0_58 = arith.constant 0 : index
    %95 = vector.load %arg5[%c0_57, %c0_58] : memref<8x1xf32, #tpu.memory_space<vmem>>, vector<8x1xf32>
    %96 = vector.broadcast %95 : vector<8x1xf32> to vector<8x256xf32>
    %97 = arith.addf %94, %96 : vector<8x256xf32>
    %cst_59 = arith.constant 0.000000e+00 : f32
    %98 = vector.broadcast %cst_59 : f32 to vector<8x256xf32>
    %99 = arith.maximumf %97, %98 : vector<8x256xf32>
    %c0_60 = arith.constant 0 : index
    %c34_61 = arith.constant 34 : index
    %100 = vector.load %arg8[%c0_60, %c34_61] : memref<8x324xf32, #tpu.memory_space<vmem>>, vector<8x256xf32>
    tpu.vector_store %arg8[%c0_60, %c34_61], %99 {strides = array<i32>} : memref<8x324xf32, #tpu.memory_space<vmem>>, vector<8x256xf32>,
    %cst_62 = arith.constant 0.000000e+00 : f32
    %101 = vector.broadcast %cst_62 : f32 to vector<8x256xf32>
    %c0_63 = arith.constant 0 : index
    %c0_64 = arith.constant 0 : index
    %102 = vector.load %arg8[%c0_63, %c0_64] : memref<8x324xf32, #tpu.memory_space<vmem>>, vector<8x256xf32>
    %103 = vector.broadcast %24 : vector<1x256xf32> to vector<8x256xf32>
    %104 = arith.mulf %102, %103 : vector<8x256xf32>
    %c0_65 = arith.constant 0 : index
    %c0_66 = arith.constant 0 : index
    %c0_67 = arith.constant 0 : index
    %105 = vector.load %arg6[%c0_65, %c0_66, %c0_67] : memref<9x8x8xf32, #tpu.memory_space<vmem>>, vector<1x8x8xf32>
    %106 = vector.shape_cast %105 : vector<1x8x8xf32> to vector<8x8xf32>
    %cst_68 = arith.constant dense<0.000000e+00> : vector<8x256xf32>
    %107 = tpu.matmul %106, %104, %cst_68 {dimension_numbers = #tpu.dot_dimension_numbers<[1], [0], [0], [1], [0, 0, 1, 1], [], []>} : vector<8x8xf32>, vector<8x256xf32>, vector<8x256xf32> -> vector<8x256xf32>
    %108 = arith.addf %101, %107 : vector<8x256xf32>
    %c0_69 = arith.constant 0 : index
    %c2_70 = arith.constant 2 : index
    %109 = vector.load %arg8[%c0_69, %c2_70] : memref<8x324xf32, #tpu.memory_space<vmem>>, vector<8x256xf32>
    %c1_71 = arith.constant 1 : index
    %c0_72 = arith.constant 0 : index
    %c0_73 = arith.constant 0 : index
    %110 = vector.load %arg6[%c1_71, %c0_72, %c0_73] : memref<9x8x8xf32, #tpu.memory_space<vmem>>, vector<1x8x8xf32>
    %111 = vector.shape_cast %110 : vector<1x8x8xf32> to vector<8x8xf32>
    %cst_74 = arith.constant dense<0.000000e+00> : vector<8x256xf32>
    %112 = tpu.matmul %111, %109, %cst_74 {dimension_numbers = #tpu.dot_dimension_numbers<[1], [0], [0], [1], [0, 0, 1, 1], [], []>} : vector<8x8xf32>, vector<8x256xf32>, vector<8x256xf32> -> vector<8x256xf32>
    %113 = arith.addf %108, %112 : vector<8x256xf32>
    %c0_75 = arith.constant 0 : index
    %c4_76 = arith.constant 4 : index
    %114 = vector.load %arg8[%c0_75, %c4_76] : memref<8x324xf32, #tpu.memory_space<vmem>>, vector<8x256xf32>
    %115 = vector.broadcast %28 : vector<1x256xf32> to vector<8x256xf32>
    %116 = arith.mulf %114, %115 : vector<8x256xf32>
    %c2_77 = arith.constant 2 : index
    %c0_78 = arith.constant 0 : index
    %c0_79 = arith.constant 0 : index
    %117 = vector.load %arg6[%c2_77, %c0_78, %c0_79] : memref<9x8x8xf32, #tpu.memory_space<vmem>>, vector<1x8x8xf32>
    %118 = vector.shape_cast %117 : vector<1x8x8xf32> to vector<8x8xf32>
    %cst_80 = arith.constant dense<0.000000e+00> : vector<8x256xf32>
    %119 = tpu.matmul %118, %116, %cst_80 {dimension_numbers = #tpu.dot_dimension_numbers<[1], [0], [0], [1], [0, 0, 1, 1], [], []>} : vector<8x8xf32>, vector<8x256xf32>, vector<8x256xf32> -> vector<8x256xf32>
    %120 = arith.addf %113, %119 : vector<8x256xf32>
    %c0_81 = arith.constant 0 : index
    %c32_82 = arith.constant 32 : index
    %121 = vector.load %arg8[%c0_81, %c32_82] : memref<8x324xf32, #tpu.memory_space<vmem>>, vector<8x256xf32>
    %122 = vector.broadcast %24 : vector<1x256xf32> to vector<8x256xf32>
    %123 = arith.mulf %121, %122 : vector<8x256xf32>
    %c3_83 = arith.constant 3 : index
    %c0_84 = arith.constant 0 : index
    %c0_85 = arith.constant 0 : index
    %124 = vector.load %arg6[%c3_83, %c0_84, %c0_85] : memref<9x8x8xf32, #tpu.memory_space<vmem>>, vector<1x8x8xf32>
    %125 = vector.shape_cast %124 : vector<1x8x8xf32> to vector<8x8xf32>
    %cst_86 = arith.constant dense<0.000000e+00> : vector<8x256xf32>
    %126 = tpu.matmul %125, %123, %cst_86 {dimension_numbers = #tpu.dot_dimension_numbers<[1], [0], [0], [1], [0, 0, 1, 1], [], []>} : vector<8x8xf32>, vector<8x256xf32>, vector<8x256xf32> -> vector<8x256xf32>
    %127 = arith.addf %120, %126 : vector<8x256xf32>
    %c0_87 = arith.constant 0 : index
    %c34_88 = arith.constant 34 : index
    %128 = vector.load %arg8[%c0_87, %c34_88] : memref<8x324xf32, #tpu.memory_space<vmem>>, vector<8x256xf32>
    %c4_89 = arith.constant 4 : index
    %c0_90 = arith.constant 0 : index
    %c0_91 = arith.constant 0 : index
    %129 = vector.load %arg6[%c4_89, %c0_90, %c0_91] : memref<9x8x8xf32, #tpu.memory_space<vmem>>, vector<1x8x8xf32>
    %130 = vector.shape_cast %129 : vector<1x8x8xf32> to vector<8x8xf32>
    %cst_92 = arith.constant dense<0.000000e+00> : vector<8x256xf32>
    %131 = tpu.matmul %130, %128, %cst_92 {dimension_numbers = #tpu.dot_dimension_numbers<[1], [0], [0], [1], [0, 0, 1, 1], [], []>} : vector<8x8xf32>, vector<8x256xf32>, vector<8x256xf32> -> vector<8x256xf32>
    %132 = arith.addf %127, %131 : vector<8x256xf32>
    %c0_93 = arith.constant 0 : index
    %c36_94 = arith.constant 36 : index
    %133 = vector.load %arg8[%c0_93, %c36_94] : memref<8x324xf32, #tpu.memory_space<vmem>>, vector<8x256xf32>
    %134 = vector.broadcast %28 : vector<1x256xf32> to vector<8x256xf32>
    %135 = arith.mulf %133, %134 : vector<8x256xf32>
    %c5_95 = arith.constant 5 : index
    %c0_96 = arith.constant 0 : index
    %c0_97 = arith.constant 0 : index
    %136 = vector.load %arg6[%c5_95, %c0_96, %c0_97] : memref<9x8x8xf32, #tpu.memory_space<vmem>>, vector<1x8x8xf32>
    %137 = vector.shape_cast %136 : vector<1x8x8xf32> to vector<8x8xf32>
    %cst_98 = arith.constant dense<0.000000e+00> : vector<8x256xf32>
    %138 = tpu.matmul %137, %135, %cst_98 {dimension_numbers = #tpu.dot_dimension_numbers<[1], [0], [0], [1], [0, 0, 1, 1], [], []>} : vector<8x8xf32>, vector<8x256xf32>, vector<8x256xf32> -> vector<8x256xf32>
    %139 = arith.addf %132, %138 : vector<8x256xf32>
    %c0_99 = arith.constant 0 : index
    %c64_100 = arith.constant 64 : index
    %140 = vector.load %arg8[%c0_99, %c64_100] : memref<8x324xf32, #tpu.memory_space<vmem>>, vector<8x256xf32>
    %141 = vector.broadcast %24 : vector<1x256xf32> to vector<8x256xf32>
    %142 = arith.mulf %140, %141 : vector<8x256xf32>
    %c6_101 = arith.constant 6 : index
    %c0_102 = arith.constant 0 : index
    %c0_103 = arith.constant 0 : index
    %143 = vector.load %arg6[%c6_101, %c0_102, %c0_103] : memref<9x8x8xf32, #tpu.memory_space<vmem>>, vector<1x8x8xf32>
    %144 = vector.shape_cast %143 : vector<1x8x8xf32> to vector<8x8xf32>
    %cst_104 = arith.constant dense<0.000000e+00> : vector<8x256xf32>
    %145 = tpu.matmul %144, %142, %cst_104 {dimension_numbers = #tpu.dot_dimension_numbers<[1], [0], [0], [1], [0, 0, 1, 1], [], []>} : vector<8x8xf32>, vector<8x256xf32>, vector<8x256xf32> -> vector<8x256xf32>
    %146 = arith.addf %139, %145 : vector<8x256xf32>
    %c0_105 = arith.constant 0 : index
    %c66_106 = arith.constant 66 : index
    %147 = vector.load %arg8[%c0_105, %c66_106] : memref<8x324xf32, #tpu.memory_space<vmem>>, vector<8x256xf32>
    %c7_107 = arith.constant 7 : index
    %c0_108 = arith.constant 0 : index
    %c0_109 = arith.constant 0 : index
    %148 = vector.load %arg6[%c7_107, %c0_108, %c0_109] : memref<9x8x8xf32, #tpu.memory_space<vmem>>, vector<1x8x8xf32>
    %149 = vector.shape_cast %148 : vector<1x8x8xf32> to vector<8x8xf32>
    %cst_110 = arith.constant dense<0.000000e+00> : vector<8x256xf32>
    %150 = tpu.matmul %149, %147, %cst_110 {dimension_numbers = #tpu.dot_dimension_numbers<[1], [0], [0], [1], [0, 0, 1, 1], [], []>} : vector<8x8xf32>, vector<8x256xf32>, vector<8x256xf32> -> vector<8x256xf32>
    %151 = arith.addf %146, %150 : vector<8x256xf32>
    %c0_111 = arith.constant 0 : index
    %c68_112 = arith.constant 68 : index
    %152 = vector.load %arg8[%c0_111, %c68_112] : memref<8x324xf32, #tpu.memory_space<vmem>>, vector<8x256xf32>
    %153 = vector.broadcast %28 : vector<1x256xf32> to vector<8x256xf32>
    %154 = arith.mulf %152, %153 : vector<8x256xf32>
    %c8_113 = arith.constant 8 : index
    %c0_114 = arith.constant 0 : index
    %c0_115 = arith.constant 0 : index
    %155 = vector.load %arg6[%c8_113, %c0_114, %c0_115] : memref<9x8x8xf32, #tpu.memory_space<vmem>>, vector<1x8x8xf32>
    %156 = vector.shape_cast %155 : vector<1x8x8xf32> to vector<8x8xf32>
    %cst_116 = arith.constant dense<0.000000e+00> : vector<8x256xf32>
    %157 = tpu.matmul %156, %154, %cst_116 {dimension_numbers = #tpu.dot_dimension_numbers<[1], [0], [0], [1], [0, 0, 1, 1], [], []>} : vector<8x8xf32>, vector<8x256xf32>, vector<8x256xf32> -> vector<8x256xf32>
    %158 = arith.addf %151, %157 : vector<8x256xf32>
    %159 = arith.addf %158, %3 : vector<8x256xf32>
    %cst_117 = arith.constant 0.000000e+00 : f32
    %160 = vector.broadcast %cst_117 : f32 to vector<8x256xf32>
    %161 = arith.maximumf %159, %160 : vector<8x256xf32>
    %c0_118 = arith.constant 0 : index
    %c0_119 = arith.constant 0 : index
    %c0_120 = arith.constant 0 : index
    %162 = vector.load %arg7[%c0_118, %c0_119, %c0_120] : memref<1x8x256xf32, #tpu.memory_space<vmem>>, vector<1x8x256xf32>
    %163 = vector.shape_cast %162 : vector<1x8x256xf32> to vector<8x256xf32>
    %164 = vector.shape_cast %161 : vector<8x256xf32> to vector<1x8x256xf32>
    tpu.vector_store %arg7[%c0_118, %c0_119, %c0_120], %164 {strides = array<i32>} : memref<1x8x256xf32, #tpu.memory_space<vmem>>, vector<1x8x256xf32>,
    return
  }
  func.func @transform_0(%arg0: i32) -> (i32, i32, i32) {
    %c0_i32 = arith.constant 0 : i32
    %c0_i32_0 = arith.constant 0 : i32
    %c0_i32_1 = arith.constant 0 : i32
    return %arg0, %c0_i32, %c0_i32_0 : i32, i32, i32
  }
  func.func @transform_1(%arg0: i32) -> (i32, i32) {
    %c0_i32 = arith.constant 0 : i32
    %c0_i32_0 = arith.constant 0 : i32
    %c0_i32_1 = arith.constant 0 : i32
    return %c0_i32, %c0_i32_0 : i32, i32
  }
  func.func @transform_2(%arg0: i32) -> (i32, i32, i32) {
    %c0_i32 = arith.constant 0 : i32
    %c0_i32_0 = arith.constant 0 : i32
    %c0_i32_1 = arith.constant 0 : i32
    %c0_i32_2 = arith.constant 0 : i32
    return %c0_i32, %c0_i32_0, %c0_i32_1 : i32, i32, i32
  }
  func.func @transform_3(%arg0: i32) -> (i32, i32) {
    %c0_i32 = arith.constant 0 : i32
    %c0_i32_0 = arith.constant 0 : i32
    %c0_i32_1 = arith.constant 0 : i32
    return %c0_i32, %c0_i32_0 : i32, i32
  }
  func.func @transform_4(%arg0: i32) -> (i32, i32) {
    %c0_i32 = arith.constant 0 : i32
    %c0_i32_0 = arith.constant 0 : i32
    %c0_i32_1 = arith.constant 0 : i32
    return %c0_i32, %c0_i32_0 : i32, i32
  }
  func.func @transform_5(%arg0: i32) -> (i32, i32, i32) {
    %c0_i32 = arith.constant 0 : i32
    %c0_i32_0 = arith.constant 0 : i32
    %c0_i32_1 = arith.constant 0 : i32
    %c0_i32_2 = arith.constant 0 : i32
    return %c0_i32, %c0_i32_0, %c0_i32_1 : i32, i32, i32
  }
  func.func @transform_6(%arg0: i32) -> (i32, i32, i32) {
    %c0_i32 = arith.constant 0 : i32
    %c0_i32_0 = arith.constant 0 : i32
    %c0_i32_1 = arith.constant 0 : i32
    return %arg0, %c0_i32, %c0_i32_0 : i32, i32, i32
  }
}

</mosaic_0001>

<bundles_post_ra>
// kernel: tpu_custom_call.1
= control target key start
LH: loop header
LB: loop body
LE: loop exit
PB: predicated region body
PF: predicated region fallthrough
CT: control target
= control target key end

     0   :  { %11 = vsyncpa [#allocation4], 0  ;;  %s2846_s0 = inlined_call_operand.vmem [shape: f32[2,4,256], index: 0, kind: input, shape index: {}]   ;;  %s2847_s1 = inlined_call_operand.vmem [shape: f32[8,4], index: 1, kind: input, shape index: {}]   ;;  %s2848_s2 = inlined_call_operand.vmem [shape: f32[9,8,8], index: 2, kind: input, shape index: {}]   ;;  %s2849_s3 = inlined_call_operand.vmem [shape: f32[8,1], index: 3, kind: input, shape index: {}]   ;;  %s2850_s4 = inlined_call_operand.vmem [shape: f32[8,1], index: 4, kind: input, shape index: {}]   ;;  %s2851_s5 = inlined_call_operand.vmem [shape: f32[9,8,8], index: 5, kind: input, shape index: {}]   ;;  %s2852_s6 = inlined_call_operand.hbm [shape: f32[2,8,256], index: 6, kind: output, shape index: {}]  }
   0x1   :  { %13 = vsyncpa [#allocation4 + $0x1], 0  ;;  %s2438_s21 = smov 0   ;;  %s2440_s22 = smov 0  }
   0x2   :  { %s2442_s23 = smov 0   ;;  %s2444_s24 = smov 0  }
   0x3 LB: > { %s2459_s25 = sadd.s32 4294967295, %s2385_s24   ;;  %s2188_s26 = sadd.s32 4294967294, %s2385_s24   ;;  %s2385_s24 = sphi %s2444_s24, %s2858_s24   ;;  %s2381_s23 = sphi %s2442_s23, %s2857_s23   ;;  %s2377_s22 = sphi %s2440_s22, %s2856_s22   ;;  %s2373_s21 = sphi %s2438_s21, %s2855_s21  }
   0x4   : > { %s2463_s27 = sadd.s32 1, %s2385_s24   ;;  %s157_s28 = sadd.s32 1, %s2381_s23 }
   0x5   : > { %s154_s29 = ssub.s32 %s2385_s24, %s2463_s27  ;;  %p167_p0 = scmp.ne.s32.totalorder %s2381_s23, %s2377_s22 }
   0x6   : > { %p155_p1 = scmp.eq.s32.totalorder %s154_s29, 0  ;;  %p168_p2 = scmp.eq.s32.totalorder %s2459_s25, 1 }
   0x7   : > { %p173_p3 = scmp.ne.s32.totalorder %s2377_s22, %s2373_s21  ;;  %p174_p4 = scmp.eq.s32.totalorder %s2188_s26, 1 }
   0x8   : > { %s2474_s30 = scalar_select %p155_p1, %s2381_s23, %s157_s28  }
   0x9   : > { %p2476_p5 = por %p168_p2, %p167_p0  ;;  %p2480_p6 = por %p174_p4, %p173_p3 }
   0xa   : > { %p2191_p7 = scmp.ge.s32.totalorder %s2385_s24, 1  ;;  %p215_p8 = scmp.lt.s32.totalorder %s2385_s24, 3 }
   0xc   : > { %p216_p9 = pnand %p2191_p7, %p215_p8 }
   0xd   : > { %p245_p10 = scmp.lt.s32.totalorder (!%p216_p9), %s2459_s25, 1  ;;  %s2388_s16 = smov (!%p216_p9), 4  }
   0xe   : > { %219 = sbr.rel (%p216_p9) target bundleno = 1206 (0x4b6), region = 44  ;;  %s2389_s17 = smov (!%p216_p9), 32  }
   0xf   : > { %s2390_s18 = smov (!%p216_p9), 64   ;;  %s2391_s19 = smov (!%p216_p9), 34  }
  0x10   : > { %s2392_s20 = smov (!%p216_p9), 36   ;;  %s2393_s26 = smov (!%p216_p9), 68  }
  0x11   : > { %s2394_s28 = smov (!%p216_p9), 126   ;;  %s2395_s29 = smov (!%p216_p9), 94  }
  0x12   : > { %s2398_s11 = smov (!%p216_p9), 92   ;;  %s2399_s14 = smov (!%p216_p9), 62  }
  0x13   : > { %v334_v0 = vlaneseq  ;;  %v2387_v1 = vmov 0.0   ;;  %s246_s9 = scalar_select %p245_p10, %s2459_s25, 1  ;;  %vm258_vm0 = vcmask 1043456   ;;  %v251_v9 = vld [vmem:[%s2847_s1] sm:$0xff]  ;;  %vm254_vm2 = vcmask 31744  }
  0x14   : > { %327 = vmatprep.mubr.f32.mxu0 %v2387_v1  ;;  %481 = vmatprep.mubr.f32.mxu1 %v2387_v1  ;;  %vm373_vm6 = vcmask 277504   ;;  %vm375_vm7 = vcmask 556304   ;;  %vm387_vm8 = vcmask 1047824   ;;  %v395_v36 = vld [vmem:[%s2848_s2] sm:$0xff]  ;;  %vm413_vm9 = vcmask 64512   ;;  %s2401_s15 = smov 60  }
  0x15   : > { %v335_v2 = vand.u32 127, %v334_v0  ;;  %s2241_s10 = sshll.u32 %s246_s9, 3  ;;  %374 = vst.msk [vmem:[#allocation2] sm:$0xff] %vm373_vm6, %v2387_v1  ;;  %s2396_s9 = smov 96   ;;  %vm673_vm10 = vcmask 261120   ;;  %vm970_vm11 = vcmask 523264  }
  0x16   : > { %s249_s13 = scalar_lea.vmem %s2846_s0, %s2241_s10  ;;  %376 = vst.msk [vmem:[#allocation2 + $0x10] sm:$0xff] %vm375_vm7, %v2387_v1  ;;  %s2397_s10 = smov 124   ;;  %vm866_vm12 = vcmask 293888   ;;  %vm1162_vm13 = vcmask 556032   ;;  %v2400_v57 = vmov 0   ;;  %v1262_v61 = vld [vmem:[%s2849_s3] sm:$0xff] }
  0x17   : > { %v336_v3 = vadd.s32 128, %v335_v2  ;;  %v341_v4 = vand.u32 15, %v335_v2  ;;  %v250_v5 = vld [vmem:[%s249_s13] sm:$0xff]  ;;  %2322 = vset.pattern.permute.xlu1 %v2400_v57  ;;  %2323 = vset.pattern.permute.xlu0 %v2400_v57  ;;  %vm408_vm14 = vcmask 1031168   ;;  %vm586_vm15 = vcmask 1014784   ;;  %v2213_v57 = vld [vmem:[%s2848_s2 + $0x30] sm:$0xff] }
  0x18   : > { %v253_v7 = vcombine.high %v250_v5, %v250_v5  ;;  %v1270_v62 = vld [vmem:[%s2850_s4] sm:$0xff] }
  0x19   : > { %v348_v6 = vand.u32 15, %v336_v3  ;;  %vm367_vm1 = vcmp.lt.s32.totalorder %v341_v4, 14  ;;  %vm361_vm4 = vcmp.ge.s32.totalorder %v341_v4, 2 }
  0x1a   : > { %v2200_v8 = vsel %vm367_vm1, 1.0, %v2387_v1  ;;  %2195 = vmatprep.subr.msk.mxu0 %vm258_vm0, %v253_v7  ;;  %v2501_v12 = vsel %vm361_vm4, 1.0, %v2387_v1  ;;  %vm692_vm1 = vcmask 785408   ;;  %vm1181_vm4 = vcmask 490496  }
  0x1b   : > { %vm368_vm3 = vcmp.lt.s32.totalorder %v348_v6, 14  ;;  %2196 = vmatpush1.msk.msra.mxu0 %vm258_vm0, %v250_v5  ;;  %vm362_vm5 = vcmp.ge.s32.totalorder %v348_v6, 2  ;;  %vm781_vm0 = vcmask 769024  }
  0x1c   : > { %v2201_v10 = vsel %vm368_vm3, 1.0, %v2387_v1  ;;  %2197 = vmatmul.mubr.msk.f32.vlgmr.msra.gmra.mxu0 %vm254_vm2, %v251_v9  ;;  %v2504_v13 = vsel %vm362_vm5, 1.0, %v2387_v1  ;;  %vm1077_vm3 = vcmask 506880  }
  0x1d   : > { %v2297_v11 = vpack.i.bf16 %v2201_v10, %v2200_v8  ;;  %555 = vmatprep.mubr.f32.mxu0 %v2387_v1  ;;  %v2302_v14 = vpack.i.bf16 %v2504_v13, %v2501_v12 }
  0x1f   : > { %2298 = vrot.lane.b32.xlu1 %v2297_v11, %s2388_s16 }
  0x23   : > { %2303 = vrot.lane.b32.xlu1 %v2302_v14, %s2389_s17 }
  0x27   : > { %2313 = vrot.lane.b32.xlu1 %v2302_v14, %s2390_s18  ;;  %v2202_v14 = vld [vmem:[%s2848_s2 + $0x8] sm:$0xff] }
  0x91   : > { %v2299_v18 = vpop.permute.xlu1 %2298 }
  0x92   : > { %v2541_v29 = vunpack.i.l.bf16 %v2299_v18  ;;  %v2574_v39 = vunpack.i.h.bf16 %v2299_v18 }
  0x94   : > { %v2588_v43 = vsel %vm254_vm2, %v2541_v29, %v2574_v39  ;;  %vm885_vm2 = vcmask 752640  }
  0x95   : > { %v2304_v22 = vpop.permute.xlu1 %2303 }
  0x96   : > { %v2529_v24 = vunpack.i.l.bf16 %v2304_v22  ;;  %v2564_v37 = vunpack.i.h.bf16 %v2304_v22 }
  0x98   : > { %v2600_v47 = vsel %vm673_vm10, %v2529_v24, %v2564_v37 }
  0x99   : > { %v2314_v30 = vpop.permute.xlu1 %2313 }
  0x9a   : > { %v2550_v33 = vunpack.i.l.bf16 %v2314_v30  ;;  %v2590_v44 = vunpack.i.h.bf16 %v2314_v30 }
  0x9c   : > { %v2613_v52 = vsel %vm970_vm11, %v2550_v33, %v2590_v44 }
  0xdc   : > { %v2512_v15 = vpop.f32.mrf.mxu0 }
  0xdd   : > { %379 = vrot.lane.b32.xlu0 %v2512_v15, %s2391_s19 }
  0xde   : > { %v2516_v16 = vpop.f32.mrf.mxu0 }
  0xe1   : > { %381 = vrot.lane.b32.xlu0 %v2516_v16, %s2391_s19 }
  0xe5   : > { %2308 = vrot.lane.b32.xlu0 %v2297_v11, %s2392_s20 }
  0xe9   : > { %2318 = vrot.lane.b32.xlu0 %v2297_v11, %s2393_s26 }
 0x14f   : > { %v380_v17 = vpop.permute.xlu0 %379 }
 0x150   : > { %388 = vst.msk [vmem:[#allocation2] sm:$0xff] %vm387_vm8, %v380_v17 }
 0x153   : > { %v382_v19 = vpop.permute.xlu0 %381 }
 0x154   : > { %v2522_v20 = vsel %vm373_vm6, %v380_v17, %v382_v19  ;;  %390 = vst.msk [vmem:[#allocation2 + $0x10] sm:$0xff] %vm373_vm6, %v382_v19 }
 0x155   : > { %v394_v21 = vmul.f32 %v2504_v13, %v2522_v20  ;;  %v573_v45 = vmul.f32 %v2588_v43, %v2522_v20  ;;  %v679_v49 = vmul.f32 %v2600_v47, %v2522_v20  ;;  %v976_v54 = vmul.f32 %v2613_v52, %v2522_v20 }
 0x157   : > { %v2527_v23 = vld [vmem:[#allocation2] sm:$0xff]  ;;  %521 = vmatprep.subr.mxu0 %v394_v21  ;;  %v2309_v27 = vpop.permute.xlu0 %2308 }
 0x158   : > { %402 = vrot.lane.b32.xlu1 %v2527_v23, %s2394_s28  ;;  %775 = vrot.lane.b32.xlu0 %v2527_v23, %s2395_s29  ;;  %v393_v25 = vmul.f32 %v2501_v12, %v2527_v23  ;;  %v678_v26 = vmul.f32 %v2529_v24, %v2527_v23  ;;  %v2546_v31 = vunpack.i.l.bf16 %v2309_v27  ;;  %v572_v32 = vmul.f32 %v2541_v29, %v2527_v23 }
 0x159   : > { %v975_v34 = vmul.f32 %v2550_v33, %v2527_v23  ;;  %v2576_v40 = vunpack.i.h.bf16 %v2309_v27 }
 0x15a   : > { %522 = vmatpush1.msra.mxu0 %v393_v25  ;;  %v871_v35 = vmul.f32 %v2546_v31, %v2527_v23 }
 0x15b   : > { %v2539_v28 = vld [vmem:[#allocation2 + $0x10] sm:$0xff]  ;;  %2204 = vmatmul.mubr.msk.f32.vlgmr.msra.gmra.mxu0 %vm413_vm9, %v395_v36  ;;  %v2319_v48 = vpop.permute.xlu0 %2318  ;;  %v2617_v53 = vsel %vm866_vm12, %v2546_v31, %v2576_v40  ;;  %v2207_v36 = vld [vmem:[%s2848_s2 + $0x18] sm:$0xff] }
 0x15c   : > { %686 = vrot.lane.b32.xlu1 %v678_v26, %s2396_s9  ;;  %406 = vrot.lane.b32.xlu0 %v2539_v28, %s2394_s28  ;;  %v680_v38 = vmul.f32 %v2564_v37, %v2539_v28  ;;  %v873_v41 = vmul.f32 %v2576_v40, %v2539_v28  ;;  %v574_v42 = vmul.f32 %v2574_v39, %v2539_v28  ;;  %v2606_v50 = vunpack.i.h.bf16 %v2319_v48  ;;  %v2205_v26 = vld [vmem:[%s2848_s2 + $0x10] sm:$0xff] }
 0x15d   : > { %764 = vmatprep.mubr.f32.mxu0 %v2387_v1  ;;  %v977_v46 = vmul.f32 %v2590_v44, %v2539_v28  ;;  %v2608_v51 = vunpack.i.l.bf16 %v2319_v48  ;;  %v872_v55 = vmul.f32 %v2617_v53, %v2522_v20 }
 0x15e   : > { %v1169_v60 = vmul.f32 %v2606_v50, %v2539_v28 }
 0x15f   : > { %v2628_v56 = vsel %vm1162_vm13, %v2608_v51, %v2606_v50  ;;  %v1167_v59 = vmul.f32 %v2608_v51, %v2527_v23 }
 0x160   : > { %779 = vrot.lane.b32.xlu1 %v2539_v28, %s2395_s29  ;;  %580 = vrot.lane.b32.xlu0 %v572_v32, %s2397_s10  ;;  %v1168_v58 = vmul.f32 %v2628_v56, %v2522_v20 }
 0x164   : > { %983 = vrot.lane.b32.xlu0 %v975_v34, %s2390_s18  ;;  %879 = vrot.lane.b32.xlu1 %v871_v35, %s2398_s11 }
 0x168   : > { %777 = vrot.lane.b32.xlu0 %v2522_v20, %s2395_s29  ;;  %404 = vrot.lane.b32.xlu1 %v2522_v20, %s2394_s28 }
 0x16c   : > { %690 = vrot.lane.b32.xlu0 %v680_v38, %s2396_s9  ;;  %1073 = vrot.lane.b32.xlu1 %v2522_v20, %s2399_s14  ;;  %v2209_v38 = vld [vmem:[%s2848_s2 + $0x20] sm:$0xff] }
 0x170   : > { %883 = vrot.lane.b32.xlu0 %v873_v41, %s2398_s11  ;;  %584 = vrot.lane.b32.xlu1 %v574_v42, %s2397_s10 }
 0x174   : > { %582 = vrot.lane.b32.xlu0 %v573_v45, %s2397_s10  ;;  %987 = vrot.lane.b32.xlu1 %v977_v46, %s2390_s18 }
 0x178   : > { %1075 = vrot.lane.b32.xlu0 %v2539_v28, %s2399_s14  ;;  %688 = vrot.lane.b32.xlu1 %v679_v49, %s2396_s9 }
 0x17c   : > { %985 = vrot.lane.b32.xlu0 %v976_v54, %s2390_s18  ;;  %881 = vrot.lane.b32.xlu1 %v872_v55, %s2398_s11  ;;  %v2211_v54 = vld [vmem:[%s2848_s2 + $0x28] sm:$0xff] }
 0x180   : > { %1177 = vrot.lane.b32.xlu0 %v1168_v58, %s2401_s15  ;;  %1071 = vrot.lane.b32.xlu1 %v2527_v23, %s2399_s14 }
 0x184   : > { %1175 = vrot.lane.b32.xlu0 %v1167_v59, %s2401_s15  ;;  %1179 = vrot.lane.b32.xlu1 %v1169_v60, %s2401_s15 }
 0x188   : > { %1265 = vperm.xlu1 %2322, %v1262_v61   ;;  %1273 = vperm.xlu0 %2323, %v1270_v62   ;;  %v2215_v61 = vld [vmem:[%s2848_s2 + $0x38] sm:$0xff] }
 0x1ca   : > { %v403_v63 = vpop.permute.xlu1 %402  ;;  %v776_v0 = vpop.permute.xlu0 %775 }
 0x1ce   : > { %v687_v2 = vpop.permute.xlu1 %686  ;;  %v407_v3 = vpop.permute.xlu0 %406 }
 0x1d2   : > { %v780_v4 = vpop.permute.xlu1 %779  ;;  %v581_v5 = vpop.permute.xlu0 %580 }
 0x1d6   : > { %v984_v6 = vpop.permute.xlu0 %983  ;;  %v880_v7 = vpop.permute.xlu1 %879 }
 0x1da   : > { %v778_v8 = vpop.permute.xlu0 %777  ;;  %v405_v9 = vpop.permute.xlu1 %404 }
 0x1db   : > { %v410_v10 = vsel %vm408_vm14, %v405_v9, %v407_v3  ;;  %v409_v11 = vsel %vm408_vm14, %v403_v63, %v405_v9  ;;  %v783_v27 = vsel %vm781_vm0, %v778_v8, %v780_v4  ;;  %v782_v28 = vsel %vm781_vm0, %v776_v0, %v778_v8  ;;  %v2217_v3 = vld [vmem:[%s2848_s2 + $0x40] sm:$0xff] }
 0x1dc   : > { %447 = vmatprep.subr.mxu1 %v410_v10 }
 0x1dd   : > { %448 = vmatpush1.msra.mxu1 %v409_v11 }
 0x1de   : > { %v691_v17 = vpop.permute.xlu0 %690  ;;  %v1074_v18 = vpop.permute.xlu1 %1073  ;;  %2203 = vmatmul.mubr.msk.f32.vlgmr.msra.gmra.mxu1 %vm413_vm9, %v2202_v14 }
 0x1df   : > { %658 = vmatprep.mubr.f32.mxu1 %v2387_v1 }
 0x1e2   : > { %v884_v19 = vpop.permute.xlu0 %883  ;;  %v585_v20 = vpop.permute.xlu1 %584 }
 0x1e6   : > { %v583_v21 = vpop.permute.xlu0 %582  ;;  %v988_v22 = vpop.permute.xlu1 %987 }
 0x1e7   : > { %v587_v23 = vsel %vm586_vm15, %v581_v5, %v583_v21  ;;  %v588_v25 = vsel %vm586_vm15, %v583_v21, %v585_v20 }
 0x1e8   : > { %624 = vmatprep.subr.mxu1 %v588_v25 }
 0x1e9   : > { %625 = vmatpush1.msra.mxu1 %v587_v23 }
 0x1ea   : > { %v1076_v30 = vpop.permute.xlu0 %1075  ;;  %2206 = vmatmul.mubr.msk.f32.vlgmr.msra.gmra.mxu1 %vm413_vm9, %v2205_v26  ;;  %819 = vmatprep.subr.mxu1 %v783_v27  ;;  %v689_v32 = vpop.permute.xlu1 %688 }
 0x1eb   : > { %v693_v34 = vsel %vm692_vm1, %v687_v2, %v689_v32  ;;  %820 = vmatpush1.msra.mxu1 %v782_v28  ;;  %v694_v35 = vsel %vm692_vm1, %v689_v32, %v691_v17  ;;  %853 = vmatprep.mubr.f32.mxu1 %v2387_v1  ;;  %v1079_v55 = vsel %vm1077_vm3, %v1074_v18, %v1076_v30 }
 0x1ec   : > { %730 = vmatprep.subr.mxu0 %v694_v35 }
 0x1ed   : > { %731 = vmatpush1.msra.mxu0 %v693_v34 }
 0x1ee   : > { %v986_v41 = vpop.permute.xlu0 %985  ;;  %2208 = vmatmul.mubr.msk.f32.vlgmr.msra.gmra.mxu0 %vm413_vm9, %v2207_v36  ;;  %v882_v42 = vpop.permute.xlu1 %881  ;;  %2210 = vmatmul.mubr.msk.f32.vlgmr.msra.gmra.mxu1 %vm413_vm9, %v2209_v38 }
 0x1ef   : > { %v989_v45 = vsel %vm970_vm11, %v984_v6, %v986_v41  ;;  %v886_v46 = vsel %vm885_vm2, %v880_v7, %v882_v42  ;;  %v887_v48 = vsel %vm885_vm2, %v882_v42, %v884_v19  ;;  %v990_v49 = vsel %vm970_vm11, %v986_v41, %v988_v22  ;;  %957 = vmatprep.mubr.f32.mxu0 %v2387_v1 }
 0x1f0   : > { %923 = vmatprep.subr.mxu0 %v887_v48  ;;  %1026 = vmatprep.subr.mxu1 %v990_v49 }
 0x1f1   : > { %924 = vmatpush1.msra.mxu0 %v886_v46  ;;  %1027 = vmatpush1.msra.mxu1 %v989_v45 }
 0x1f2   : > { %v1178_v58 = vpop.permute.xlu0 %1177  ;;  %2212 = vmatmul.mubr.msk.f32.vlgmr.msra.gmra.mxu0 %vm413_vm9, %v2211_v54  ;;  %1115 = vmatprep.subr.mxu0 %v1079_v55  ;;  %v1072_v59 = vpop.permute.xlu1 %1071 }
 0x1f3   : > { %v1078_v60 = vsel %vm1077_vm3, %v1072_v59, %v1074_v18  ;;  %1060 = vmatprep.mubr.f32.mxu1 %v2387_v1  ;;  %1149 = vmatprep.mubr.f32.mxu0 %v2387_v1 }
 0x1f4   : > { %2214 = vmatmul.mubr.msk.f32.vlgmr.msra.gmra.mxu1 %vm413_vm9, %v2213_v57  ;;  %1116 = vmatpush1.msra.mxu0 %v1078_v60 }
 0x1f5   : > { %1253 = vmatprep.mubr.f32.mxu1 %v2387_v1 }
 0x1f6   : > { %v1176_v62 = vpop.permute.xlu0 %1175  ;;  %2216 = vmatmul.mubr.msk.f32.vlgmr.msra.gmra.mxu0 %vm413_vm9, %v2215_v61  ;;  %v1180_v63 = vpop.permute.xlu1 %1179 }
 0x1f7   : > { %v1182_v0 = vsel %vm1181_vm4, %v1176_v62, %v1178_v58  ;;  %v1183_v2 = vsel %vm1181_vm4, %v1178_v58, %v1180_v63  ;;  %1381 = vmatprep.mubr.f32.mxu0 %v2387_v1 }
 0x1f8   : > { %1219 = vmatprep.subr.mxu1 %v1183_v2 }
 0x1f9   : > { %1220 = vmatpush1.msra.mxu1 %v1182_v0 }
 0x1fa   : > { %2218 = vmatmul.mubr.msk.f32.vlgmr.msra.gmra.mxu1 %vm413_vm9, %v2217_v3 }
 0x1fb   : > { %1455 = vmatprep.mubr.f32.mxu1 %v2387_v1 }
 0x203   : > { %v1266_v48 = vpop.permute.xlu1 %1265  ;;  %v1274_v57 = vpop.permute.xlu0 %1273 }
 0x21b   : > { %v557_v5 = vpop.f32.mrf.mxu0 }
 0x21d   : > { %v559_v8 = vpop.f32.mrf.mxu0 }
 0x29e   : > { %v483_v4 = vpop.f32.mrf.mxu1 }
 0x29f   : > { %v558_v7 = vadd.f32 %v557_v5, %v483_v4 }
 0x2a0   : > { %v485_v6 = vpop.f32.mrf.mxu1 }
 0x2a1   : > { %v560_v10 = vadd.f32 %v559_v8, %v485_v6 }
 0x2aa   : > { %v660_v9 = vpop.f32.mrf.mxu1 }
 0x2ab   : > { %v665_v11 = vadd.f32 %v660_v9, %v558_v7 }
 0x2ac   : > { %v662_v14 = vpop.f32.mrf.mxu1 }
 0x2ad   : > { %v666_v19 = vadd.f32 %v662_v14, %v560_v10 }
 0x2ae   : > { %v766_v17 = vpop.f32.mrf.mxu0  ;;  %v855_v18 = vpop.f32.mrf.mxu1 }
 0x2af   : > { %v771_v20 = vadd.f32 %v766_v17, %v665_v11 }
 0x2b0   : > { %v768_v21 = vpop.f32.mrf.mxu0  ;;  %v857_v22 = vpop.f32.mrf.mxu1 }
 0x2b1   : > { %v772_v23 = vadd.f32 %v768_v21, %v666_v19  ;;  %v860_v25 = vadd.f32 %v855_v18, %v771_v20 }
 0x2b2   : > { %v959_v26 = vpop.f32.mrf.mxu0 }
 0x2b3   : > { %v861_v27 = vadd.f32 %v857_v22, %v772_v23  ;;  %v964_v28 = vadd.f32 %v959_v26, %v860_v25 }
 0x2b4   : > { %v961_v30 = vpop.f32.mrf.mxu0  ;;  %v1062_v32 = vpop.f32.mrf.mxu1 }
 0x2b5   : > { %v965_v34 = vadd.f32 %v961_v30, %v861_v27  ;;  %v1067_v35 = vadd.f32 %v1062_v32, %v964_v28 }
 0x2b6   : > { %v1064_v36 = vpop.f32.mrf.mxu1  ;;  %v1151_v38 = vpop.f32.mrf.mxu0 }
 0x2b7   : > { %v1068_v41 = vadd.f32 %v1064_v36, %v965_v34  ;;  %v1156_v45 = vadd.f32 %v1151_v38, %v1067_v35  ;;  %v2222_v38 = vld [vmem:[%s2851_s5 + $0x10] sm:$0xff] }
 0x2b8   : > { %v1153_v42 = vpop.f32.mrf.mxu0 }
 0x2b9   : > { %v1157_v49 = vadd.f32 %v1153_v42, %v1068_v41 }
 0x2ba   : > { %v1255_v46 = vpop.f32.mrf.mxu1 }
 0x2bb   : > { %v1260_v54 = vadd.f32 %v1255_v46, %v1156_v45 }
 0x2bc   : > { %v1257_v55 = vpop.f32.mrf.mxu1 }
 0x2bd   : > { %v1261_v58 = vadd.f32 %v1257_v55, %v1157_v49  ;;  %v1268_v59 = vmul.f32 %v1266_v48, %v1260_v54  ;;  %v2224_v54 = vld [vmem:[%s2851_s5 + $0x18] sm:$0xff]  ;;  %v2226_v55 = vld [vmem:[%s2851_s5 + $0x20] sm:$0xff] }
 0x2bf   : > { %v1269_v60 = vmul.f32 %v1266_v48, %v1261_v58  ;;  %v1276_v61 = vadd.f32 %v1274_v57, %v1268_v59 }
 0x2c1   : > { %v1277_v62 = vadd.f32 %v1274_v57, %v1269_v60  ;;  %v1278_v63 = vmax.f32 %v1276_v61, 0.0 }
 0x2c3   : > { %1282 = vrot.lane.b32.xlu1 %v1278_v63, %s2391_s19  ;;  %v1279_v0 = vmax.f32 %v1277_v62, 0.0  ;;  %v2228_v63 = vld [vmem:[%s2851_s5 + $0x28] sm:$0xff] }
 0x2c7   : > { %1284 = vrot.lane.b32.xlu1 %v1279_v0, %s2391_s19 }
 0x335   : > { %v1283_v2 = vpop.permute.xlu1 %1282 }
 0x336   : > { %1290 = vst.msk [vmem:[#allocation2] sm:$0xff] %vm387_vm8, %v1283_v2 }
 0x339   : > { %v1285_v3 = vpop.permute.xlu1 %1284 }
 0x33a   : > { %v1286_v4 = vsel %vm373_vm6, %v1283_v2, %v1285_v3  ;;  %1292 = vst.msk [vmem:[#allocation2 + $0x10] sm:$0xff] %vm373_vm6, %v1285_v3  ;;  %v2230_v2 = vld [vmem:[%s2851_s5 + $0x30] sm:$0xff] }
 0x33b   : > { %v1296_v5 = vmul.f32 %v2504_v13, %v1286_v4  ;;  %v1463_v14 = vmul.f32 %v1286_v4, %v2588_v43  ;;  %v2015_v43 = vmul.f32 %v1286_v4, %v2628_v56 }
 0x33d   : > { %v1293_v6 = vld [vmem:[#allocation2] sm:$0xff]  ;;  %1421 = vmatprep.subr.mxu1 %v1296_v5 }
 0x33e   : > { %1652 = vrot.lane.b32.xlu1 %v1293_v6, %s2395_s29  ;;  %1304 = vrot.lane.b32.xlu0 %v1293_v6, %s2394_s28  ;;  %v1295_v7 = vmul.f32 %v2501_v12, %v1293_v6  ;;  %v1556_v8 = vmul.f32 %v2529_v24, %v1293_v6  ;;  %v1462_v10 = vmul.f32 %v2541_v29, %v1293_v6  ;;  %v1297_v12 = vld [vmem:[%s2851_s5] sm:$0xff] }
 0x33f   : > { %v1738_v13 = vmul.f32 %v2546_v31, %v1293_v6  ;;  %v1832_v11 = vmul.f32 %v2550_v33, %v1293_v6 }
 0x340   : > { %1422 = vmatpush1.msra.mxu1 %v1295_v7 }
 0x341   : > { %v1298_v9 = vld [vmem:[#allocation2 + $0x10] sm:$0xff]  ;;  %2221 = vmatmul.mubr.msk.f32.vlgmr.msra.gmra.mxu1 %vm413_vm9, %v1297_v12 }
 0x342   : > { %1564 = vrot.lane.b32.xlu0 %v1556_v8, %s2396_s9  ;;  %1308 = vrot.lane.b32.xlu1 %v1298_v9, %s2394_s28  ;;  %v1558_v24 = vmul.f32 %v2564_v37, %v1298_v9  ;;  %v1740_v29 = vmul.f32 %v2576_v40, %v1298_v9  ;;  %v1464_v31 = vmul.f32 %v2574_v39, %v1298_v9 }
 0x343   : > { %1641 = vmatprep.mubr.f32.mxu1 %v2387_v1  ;;  %v1834_v33 = vmul.f32 %v2590_v44, %v1298_v9  ;;  %v1557_v37 = vmul.f32 %v1286_v4, %v2600_v47  ;;  %v1739_v39 = vmul.f32 %v1286_v4, %v2617_v53  ;;  %v1833_v40 = vmul.f32 %v1286_v4, %v2613_v52 }
 0x344   : > { %v2016_v44 = vmul.f32 %v2606_v50, %v1298_v9  ;;  %v2014_v47 = vmul.f32 %v2608_v51, %v1293_v6  ;;  %v2219_v51 = vld [vmem:[%s2851_s5 + $0x8] sm:$0xff] }
 0x346   : > { %1656 = vrot.lane.b32.xlu0 %v1298_v9, %s2395_s29  ;;  %1470 = vrot.lane.b32.xlu1 %v1462_v10, %s2397_s10 }
 0x34a   : > { %1746 = vrot.lane.b32.xlu0 %v1738_v13, %s2398_s11  ;;  %1840 = vrot.lane.b32.xlu1 %v1832_v11, %s2390_s18  ;;  %v2234_v13 = vld [vmem:[%s2851_s5 + $0x40] sm:$0xff] }
 0x34e   : > { %1654 = vrot.lane.b32.xlu1 %v1286_v4, %s2395_s29  ;;  %1306 = vrot.lane.b32.xlu0 %v1286_v4, %s2394_s28  ;;  %s242_s28 = sand.u32 1, %s2377_s22  }
 0x34f   : > { %s2192_s29 = sshll.u32 %s242_s28, 4  ;;  %s2115_s12 = scalar_lea.sflag [#allocation4], %s242_s28 }
 0x352   : > { %1568 = vrot.lane.b32.xlu1 %v1558_v24, %s2396_s9  ;;  %1930 = vrot.lane.b32.xlu0 %v1286_v4, %s2399_s14 }
 0x356   : > { %1750 = vrot.lane.b32.xlu1 %v1740_v29, %s2398_s11  ;;  %1474 = vrot.lane.b32.xlu0 %v1464_v31, %s2397_s10 }
 0x35a   : > { %1844 = vrot.lane.b32.xlu0 %v1834_v33, %s2390_s18  ;;  %1472 = vrot.lane.b32.xlu1 %v1463_v14, %s2397_s10  ;;  %s244_s10 = scalar_lea.vmem [#allocation3], %s2192_s29 }
 0x35e   : > { %1566 = vrot.lane.b32.xlu0 %v1557_v37, %s2396_s9  ;;  %1932 = vrot.lane.b32.xlu1 %v1298_v9, %s2399_s14  ;;  %s2242_s9 = sshll.u32 %s2459_s25, 8  ;;  %s2402_s25 = smov [#allocation3]  }
 0x35f   : > { %s2127_s26 = scalar_lea.hbm %s2852_s6, %s2242_s9  ;;  %s2329_s16 = sshll.u32 %s2402_s25, 4  ;;  %s2330_s16 = int_to_ptr.vmem [resolvable:$false] %s2329_s16 }
 0x360   : > { %s2331_s17 = scalar_lea.vmem %s2330_s16, 512 }
 0x362   : > { %1748 = vrot.lane.b32.xlu0 %v1739_v39, %s2398_s11  ;;  %1842 = vrot.lane.b32.xlu1 %v1833_v40, %s2390_s18  ;;  %s2129_s11 = sshll.u32 %s244_s10, 4  ;;  %s2130_s11 = int_to_ptr.vmem [resolvable:$true] %s2129_s11 }
 0x363   : > { %s2325_s13 = scalar_lea.vmem %s2130_s11, 256  ;;  %p2332_p0 = scmp.lt.s32.totalorder %s2130_s11, %s2330_s16 }
 0x364   : > { %p2326_p11 = scmp.ne.s32.totalorder %s2130_s11, %s2325_s13  ;;  %p2333_p1 = scmp.lt.s32.totalorder %s2331_s17, %s2325_s13 }
 0x366   : > { %1928 = vrot.lane.b32.xlu0 %v1293_v6, %s2399_s14  ;;  %2024 = vrot.lane.b32.xlu1 %v2015_v43, %s2401_s15  ;;  %v2232_v6 = vld [vmem:[%s2851_s5 + $0x38] sm:$0xff]  ;;  %p2327_p12 = pnand %p2326_p11, %p2476_p5  ;;  %p2334_p2 = por %p2333_p1, %p2332_p0 }
 0x368   : > { %p2328_p13 = pneg %p2327_p12 }
 0x36a   : > { %2026 = vrot.lane.b32.xlu0 %v2016_v44, %s2401_s15  ;;  %2022 = vrot.lane.b32.xlu1 %v2014_v47, %s2401_s15  ;;  %p2335_p3 = pnand %p2334_p2, %p2328_p13 }
 0x3b0   : > { %v1305_v53 = vpop.permute.xlu0 %1304  ;;  %v1653_v52 = vpop.permute.xlu1 %1652 }
 0x3b4   : > { %v1565_v17 = vpop.permute.xlu0 %1564  ;;  %v1309_v18 = vpop.permute.xlu1 %1308 }
 0x3b8   : > { %v1657_v19 = vpop.permute.xlu0 %1656  ;;  %v1471_v20 = vpop.permute.xlu1 %1470 }
 0x3bc   : > { %v1747_v21 = vpop.permute.xlu0 %1746  ;;  %v1841_v56 = vpop.permute.xlu1 %1840 }
 0x3c0   : > { %v1307_v22 = vpop.permute.xlu0 %1306  ;;  %v1655_v23 = vpop.permute.xlu1 %1654 }
 0x3c1   : > { %v1310_v25 = vsel %vm408_vm14, %v1305_v53, %v1307_v22  ;;  %v1311_v50 = vsel %vm408_vm14, %v1307_v22, %v1309_v18  ;;  %v1659_v41 = vsel %vm781_vm0, %v1655_v23, %v1657_v19  ;;  %v1658_v42 = vsel %vm781_vm0, %v1653_v52, %v1655_v23 }
 0x3c2   : > { %1347 = vmatprep.subr.mxu0 %v1311_v50 }
 0x3c3   : > { %1348 = vmatpush1.msra.mxu0 %v1310_v25 }
 0x3c4   : > { %v1931_v26 = vpop.permute.xlu0 %1930  ;;  %v1569_v27 = vpop.permute.xlu1 %1568  ;;  %2220 = vmatmul.mubr.msk.f32.vlgmr.msra.gmra.mxu0 %vm413_vm9, %v2219_v51 }
 0x3c5   : > { %1547 = vmatprep.mubr.f32.mxu0 %v2387_v1 }
 0x3c8   : > { %v1475_v28 = vpop.permute.xlu0 %1474  ;;  %v1751_v30 = vpop.permute.xlu1 %1750 }
 0x3cc   : > { %v1845_v32 = vpop.permute.xlu0 %1844  ;;  %v1473_v34 = vpop.permute.xlu1 %1472 }
 0x3cd   : > { %v1476_v35 = vsel %vm586_vm15, %v1471_v20, %v1473_v34  ;;  %v1477_v36 = vsel %vm586_vm15, %v1473_v34, %v1475_v28 }
 0x3ce   : > { %1513 = vmatprep.subr.mxu0 %v1477_v36 }
 0x3cf   : > { %1514 = vmatpush1.msra.mxu0 %v1476_v35 }
 0x3d0   : > { %v1567_v45 = vpop.permute.xlu0 %1566  ;;  %1695 = vmatprep.subr.mxu0 %v1659_v41  ;;  %v1933_v46 = vpop.permute.xlu1 %1932  ;;  %2223 = vmatmul.mubr.msk.f32.vlgmr.msra.gmra.mxu0 %vm413_vm9, %v2222_v38 }
 0x3d1   : > { %v1570_v48 = vsel %vm692_vm1, %v1565_v17, %v1567_v45  ;;  %1696 = vmatpush1.msra.mxu0 %v1658_v42  ;;  %v1571_v49 = vsel %vm692_vm1, %v1567_v45, %v1569_v27  ;;  %1729 = vmatprep.mubr.f32.mxu0 %v2387_v1  ;;  %v1935_v0 = vsel %vm1077_vm3, %v1931_v26, %v1933_v46 }
 0x3d2   : > { %1607 = vmatprep.subr.mxu1 %v1571_v49 }
 0x3d3   : > { %1608 = vmatpush1.msra.mxu1 %v1570_v48 }
 0x3d4   : > { %v1749_v57 = vpop.permute.xlu0 %1748  ;;  %v1843_v58 = vpop.permute.xlu1 %1842  ;;  %2225 = vmatmul.mubr.msk.f32.vlgmr.msra.gmra.mxu1 %vm413_vm9, %v2224_v54  ;;  %2227 = vmatmul.mubr.msk.f32.vlgmr.msra.gmra.mxu0 %vm413_vm9, %v2226_v55 }
 0x3d5   : > { %v1752_v59 = vsel %vm885_vm2, %v1747_v21, %v1749_v57  ;;  %v1846_v60 = vsel %vm970_vm11, %v1841_v56, %v1843_v58  ;;  %v1753_v61 = vsel %vm885_vm2, %v1749_v57, %v1751_v30  ;;  %v1847_v62 = vsel %vm970_vm11, %v1843_v58, %v1845_v32  ;;  %1823 = vmatprep.mubr.f32.mxu1 %v2387_v1 }
 0x3d6   : > { %1789 = vmatprep.subr.mxu1 %v1753_v61  ;;  %1883 = vmatprep.subr.mxu0 %v1847_v62 }
 0x3d7   : > { %1790 = vmatpush1.msra.mxu1 %v1752_v59  ;;  %1884 = vmatpush1.msra.mxu0 %v1846_v60 }
 0x3d8   : > { %v1929_v3 = vpop.permute.xlu0 %1928  ;;  %1971 = vmatprep.subr.mxu1 %v1935_v0  ;;  %v2025_v4 = vpop.permute.xlu1 %2024  ;;  %2229 = vmatmul.mubr.msk.f32.vlgmr.msra.gmra.mxu1 %vm413_vm9, %v2228_v63 }
 0x3d9   : > { %v1934_v5 = vsel %vm1077_vm3, %v1929_v3, %v1931_v26  ;;  %1917 = vmatprep.mubr.f32.mxu0 %v2387_v1  ;;  %2005 = vmatprep.mubr.f32.mxu1 %v2387_v1 }
 0x3da   : > { %1972 = vmatpush1.msra.mxu1 %v1934_v5  ;;  %2231 = vmatmul.mubr.msk.f32.vlgmr.msra.gmra.mxu0 %vm413_vm9, %v2230_v2 }
 0x3db   : > { %2099 = vmatprep.mubr.f32.mxu0 %v2387_v1 }
 0x3dc   : > { %v2027_v7 = vpop.permute.xlu0 %2026  ;;  %v2023_v8 = vpop.permute.xlu1 %2022  ;;  %2233 = vmatmul.mubr.msk.f32.vlgmr.msra.gmra.mxu1 %vm413_vm9, %v2232_v6 }
 0x3dd   : > { %v2028_v9 = vsel %vm1181_vm4, %v2023_v8, %v2025_v4  ;;  %v2029_v10 = vsel %vm1181_vm4, %v2025_v4, %v2027_v7 }
 0x3de   : > { %2065 = vmatprep.subr.mxu0 %v2029_v10 }
 0x3df   : > { %2066 = vmatpush1.msra.mxu0 %v2028_v9 }
 0x3e0   : > { %2235 = vmatmul.mubr.msk.f32.vlgmr.msra.gmra.mxu0 %vm413_vm9, %v2234_v13 }
 0x401   : > { %v1457_v12 = vpop.f32.mrf.mxu1 }
 0x403   : > { %v1459_v29 = vpop.f32.mrf.mxu1 }
 0x484   : > { %v1383_v11 = vpop.f32.mrf.mxu0 }
 0x485   : > { %v1458_v1 = vadd.f32 %v1457_v12, %v1383_v11 }
 0x486   : > { %v1385_v24 = vpop.f32.mrf.mxu0 }
 0x487   : > { %v1460_v33 = vadd.f32 %v1459_v29, %v1385_v24 }
 0x490   : > { %v1549_v31 = vpop.f32.mrf.mxu0 }
 0x491   : > { %v1554_v14 = vadd.f32 %v1549_v31, %v1458_v1 }
 0x492   : > { %v1551_v37 = vpop.f32.mrf.mxu0 }
 0x493   : > { %v1555_v43 = vadd.f32 %v1551_v37, %v1460_v33 }
 0x494   : > { %v1643_v39 = vpop.f32.mrf.mxu1  ;;  %v1731_v40 = vpop.f32.mrf.mxu0 }
 0x495   : > { %v1648_v44 = vadd.f32 %v1643_v39, %v1554_v14 }
 0x496   : > { %v1645_v47 = vpop.f32.mrf.mxu1  ;;  %v1733_v53 = vpop.f32.mrf.mxu0 }
 0x497   : > { %v1649_v52 = vadd.f32 %v1645_v47, %v1555_v43  ;;  %v1736_v17 = vadd.f32 %v1731_v40, %v1648_v44 }
 0x498   : > { %v1825_v18 = vpop.f32.mrf.mxu1 }
 0x499   : > { %v1737_v19 = vadd.f32 %v1733_v53, %v1649_v52  ;;  %v1830_v20 = vadd.f32 %v1825_v18, %v1736_v17 }
 0x49a   : > { %v1827_v21 = vpop.f32.mrf.mxu1  ;;  %v1919_v56 = vpop.f32.mrf.mxu0 }
 0x49b   : > { %v1831_v22 = vadd.f32 %v1827_v21, %v1737_v19  ;;  %v1924_v23 = vadd.f32 %v1919_v56, %v1830_v20 }
 0x49c   : > { %v1921_v25 = vpop.f32.mrf.mxu0  ;;  %v2007_v50 = vpop.f32.mrf.mxu1 }
 0x49d   : > { %v1925_v51 = vadd.f32 %v1921_v25, %v1831_v22  ;;  %v2012_v27 = vadd.f32 %v2007_v50, %v1924_v23 }
 0x49e   : > { %v2009_v26 = vpop.f32.mrf.mxu1 }
 0x49f   : > { %v2013_v30 = vadd.f32 %v2009_v26, %v1925_v51 }
 0x4a0   : > { %v2101_v28 = vpop.f32.mrf.mxu0 }
 0x4a1   : > { %v2106_v32 = vadd.f32 %v2101_v28, %v2012_v27 }
 0x4a2   : > { %v2103_v34 = vpop.f32.mrf.mxu0 }
 0x4a3   : > { %v2108_v35 = vadd.f32 %v2106_v32, %v2512_v15  ;;  %v2107_v36 = vadd.f32 %v2103_v34, %v2013_v30 }
 0x4a5   : > { %v2110_v38 = vmax.f32 %v2108_v35, 0.0  ;;  %v2109_v41 = vadd.f32 %v2107_v36, %v2516_v16 }
 0x4a7   : > { %2112 = vst [vmem:[%s244_s10] sm:$0xff] %v2110_v38  ;;  %v2111_v42 = vmax.f32 %v2109_v41, 0.0 }
 0x4a9   : > { %2113 = vst [vmem:[%s244_s10 + $0x8] sm:$0xff] %v2111_v42 }
 0x4aa   : > { %2338 = shalt.err (!%p2335_p3)
}
 0x4ab   : > { %s2339_s19 = scalar_lea.hbm %s2127_s26, 256  ;;  %s2343_s28 = scalar_lea.hbm %s2852_s6, 512 }
 0x4ac   : > { %p2340_p4 = scmp.ne.s32.totalorder %s2127_s26, %s2339_s19  ;;  %p2344_p9 = scmp.lt.s32.totalorder %s2127_s26, %s2852_s6 }
 0x4ad   : > { %p2345_p10 = scmp.lt.s32.totalorder %s2343_s28, %s2339_s19 }
 0x4ae   : > { %p2341_p7 = pnand %p2340_p4, %p2476_p5 }
 0x4af   : > { %p2346_p11 = por %p2345_p10, %p2344_p9 }
 0x4b0   : > { %p2342_p8 = pneg %p2341_p7 }
 0x4b2   : > { %p2347_p12 = pnand %p2346_p11, %p2342_p8 }
 0x4b4   : > { %2350 = shalt.err (!%p2347_p12)
}
 0x4b5   : > { %2243 = dma.vmem_to_hbm [thread:$0]  (%p2476_p5), %s2130_s11, 256, %s2127_s26, %s2115_s12  }
 0x4b6 PF: > { %p2249_p13 = scmp.ge.s32.totalorder %s2385_s24, 2  ;;  %s2141_s10 = sand.u32 1, %s2373_s21  }
 0x4b7   : > { %s2142_s14 = scalar_lea.sflag [#allocation4], %s2141_s10 }
 0x4b8   : > { %p2246_p0 = pnand %p2249_p13, %p2480_p6 }
 0x4ba   : > { %p2247_p1 = pneg %p2246_p0 }
 0x4bc   : > { %2368 = dma.done.wait (%p2247_p1), %s2142_s14, 256  }
 0x4bd   : > { %2370 = vsyncadd (%p2247_p1), %s2142_s14, 4294967040  ;;  %p16_p2 = scmp.ge.s32.totalorder %s2463_s27, 4   ;;  %s2855_s21 = smov %s2377_s22 }
 0x4be   : > { %s2856_s22 = smov %s2381_s23  ;;  %s2857_s23 = smov %s2474_s30 }
 0x4bf   : > { %s2858_s24 = smov %s2463_s27  ;;  %18 = sbr.rel (!%p16_p2) target bundleno = 3 (0x3), region = 95 }
 0x4c4   :  { %2147 = vsyncpa [#allocation4], 1 }
 0x4c5   :  { %2149 = vsyncpa [#allocation4 + $0x1], 1 }

</bundles_post_ra>
